<compile_context>
chip_gen: v5e
topology: v5e:2x2
jax: 0.10.0
libtpu: 0.0.40
codegen_flags: <defaults>
</compile_context>

<pallas_src>
import jax
import jax.numpy as jnp
from jax.experimental import pallas as pl
from jax.experimental.pallas import tpu as pltpu


def _make_kernel(t_valid: int, t_tile: int):
    """Build the kernel for a given valid sequence length and time-tile size."""

    def kernel(x_ref, w_ref, b_ref, ctx_ref, out_ref, proj_ref):
        # x_ref   : (1, D_in)       row b of the input (leading B squeezed)
        # w_ref   : (D_ctx, D_in)   nn.Linear weight, un-transposed (resident)
        # b_ref   : (1, D_ctx)      bias (resident)
        # ctx_ref : (Tt, D_ctx)     time tile ti of context row b
        # out_ref : (Nt, Tt)        all score rows for batch b (resident over ti)
        # proj_ref: (1, D_ctx)      VMEM scratch, computed once per batch row
        ti = pl.program_id(1)

        # ---- proj = x @ W^T + bias, once per batch row (MXU) ---------------
        @pl.when(ti == 0)
        def _():
            proj_ref[...] = (
                jax.lax.dot_general(
                    x_ref[...], w_ref[...],
                    dimension_numbers=(((1,), (1,)), ((), ())),
                    preferred_element_type=jnp.float32)
                + b_ref[...])

        # ---- score tile: (1, Tt) = proj (1,Dc) . ctx_tile^T (MXU) ----------
        scores = jax.lax.dot_general(
            proj_ref[...], ctx_ref[...],
            dimension_numbers=(((1,), (1,)), ((), ())),
            preferred_element_type=jnp.float32)
        out_ref[pl.ds(ti, 1), :] = scores                 # lane-dense row store

        # ---- last tile: exact softmax over the resident score block --------
        @pl.when(ti == pl.num_programs(1) - 1)
        def _():
            s = out_ref[...]                               # (Nt, Tt)
            row = jax.lax.broadcasted_iota(jnp.int32, s.shape, 0)
            col = jax.lax.broadcasted_iota(jnp.int32, s.shape, 1)
            flat = row * t_tile + col                      # flat time index
            s = jnp.where(flat < t_valid, s, jnp.float32(-1e30))
            m = jnp.max(jnp.max(s, axis=1, keepdims=True), axis=0, keepdims=True)
            e = jnp.exp(s - m)
            denom = jnp.sum(jnp.sum(e, axis=1, keepdims=True), axis=0,
                            keepdims=True)
            inv = pl.reciprocal(denom, approx=True)        # EUP slot (cheap)
            inv = inv * (2.0 - denom * inv)                # one Newton step
            out_ref[...] = e * inv

    return kernel


def _choose_time_tile(t: int, d_ctx: int, tile_budget_bytes: int = 8 << 20):
    """Largest 128-multiple time tile whose double-buffered context slab fits
    the per-buffer VMEM budget, without over-padding short T."""
    t_pad128 = ((t + 127) // 128) * 128
    tile = 128
    for cand in (2048, 1024, 512, 256, 128):
        if cand <= t_pad128 and 2 * cand * d_ctx * 4 <= tile_budget_bytes:
            tile = cand
            break
    tile = min(tile, t_pad128)
    t_pad = ((t + tile - 1) // tile) * tile
    return tile, t_pad


def content_general_attention(x, context, W, b):
    """x: (B, D_in), context: (B, T, D_ctx), W: (D_ctx, D_in) [nn.Linear layout],
    b: (D_ctx,). Returns softmax attention weights of shape (B, T)."""
    B, d_in = x.shape
    Bc, T, d_ctx = context.shape
    assert B == Bc and W.shape == (d_ctx, d_in) and b.shape == (d_ctx,)

    t_tile, t_pad = _choose_time_tile(T, d_ctx)
    num_t = t_pad // t_tile
    if t_pad != T:
        # Zero-pad time so every block is full; padded positions are masked
        # inside the kernel before the softmax.
        context = jnp.pad(context, ((0, 0), (0, t_pad - T), (0, 0)))

    x3 = x.reshape(B, 1, d_in)          # free reshape; enables per-b blocking
    b2 = b.reshape(1, d_ctx)

    # Rough VMEM requirement (double-buffered context tile + resident score
    # block + resident params + proj scratch), with 2x headroom, clamped to
    # the 32 MiB scoped limit.
    est = 2 * 4 * (2 * 2 * t_tile * d_ctx + 2 * t_pad + d_in
                   + d_ctx * d_in + 2 * d_ctx)
    vmem_limit = int(min(max(est, 16 << 20), 32 << 20))

    out = pl.pallas_call(
        _make_kernel(T, t_tile),
        out_shape=jax.ShapeDtypeStruct((B, num_t, t_tile), jnp.float32),
        grid=(B, num_t),
        in_specs=[
            pl.BlockSpec((None, 1, d_in), lambda bi, ti: (bi, 0, 0)),
            pl.BlockSpec((d_ctx, d_in), lambda bi, ti: (0, 0)),
            pl.BlockSpec((1, d_ctx), lambda bi, ti: (0, 0)),
            pl.BlockSpec((None, t_tile, d_ctx), lambda bi, ti: (bi, ti, 0)),
        ],
        out_specs=pl.BlockSpec((None, num_t, t_tile), lambda bi, ti: (bi, 0, 0)),
        scratch_shapes=[pltpu.VMEM((1, d_ctx), jnp.float32)],
        compiler_params=pltpu.CompilerParams(
            dimension_semantics=("parallel", "arbitrary"),
            vmem_limit_bytes=vmem_limit),
    )(x3, W, b2, context)

    # (B, num_t, t_tile) -> (B, t_pad) is a contiguous (free) reshape.
    return out.reshape(B, t_pad)[:, :T]


def _reference(x, context, W, b):
    proj = x @ W.T + b                                  # (B, D_ctx)
    score = jnp.einsum("btc,bc->bt", context, proj)     # (B, T)
    return jax.nn.softmax(score, axis=1)


if __name__ == "__main__":
    # ---- Test 1: module-consistent small shapes (single time tile) --------
    B, T = 2, 8
    dim_input, dim_context = 32, 32
    key = jax.random.PRNGKey(0)
    k_x, k_ctx, k_w, k_b = jax.random.split(key, 4)

    x = jax.random.normal(k_x, (B, dim_input), dtype=jnp.float32)
    context = jax.random.normal(k_ctx, (B, T, dim_context), dtype=jnp.float32)
    w_prev = jnp.zeros((B, T), dtype=jnp.float32)   # unused by forward (as in PyTorch)
    W = jax.random.normal(k_w, (dim_context, dim_input), dtype=jnp.float32) * 0.1
    b = jax.random.normal(k_b, (dim_context,), dtype=jnp.float32) * 0.1

    out = jax.block_until_ready(content_general_attention(x, context, W, b))
    ref = _reference(x, context, W, b)
    assert out.shape == (B, T)
    assert jnp.allclose(out, ref, atol=1e-4, rtol=1e-4), "test1 mismatch vs reference"
    assert jnp.allclose(jnp.sum(out, axis=1), jnp.ones((B,)), atol=1e-4)

    # ---- Test 2: longer sequence exercising the tiled / padded path -------
    B2, T2, d_in2, d_ctx2 = 3, 300, 48, 96
    k_x2, k_ctx2, k_w2, k_b2 = jax.random.split(jax.random.PRNGKey(1), 4)
    x2 = jax.random.normal(k_x2, (B2, d_in2), dtype=jnp.float32) * 0.5
    ctx2 = jax.random.normal(k_ctx2, (B2, T2, d_ctx2), dtype=jnp.float32) * 0.5
    W2 = jax.random.normal(k_w2, (d_ctx2, d_in2), dtype=jnp.float32) * 0.05
    bias2 = jax.random.normal(k_b2, (d_ctx2,), dtype=jnp.float32) * 0.05

    out2 = jax.block_until_ready(content_general_attention(x2, ctx2, W2, bias2))
    ref2 = _reference(x2, ctx2, W2, bias2)
    assert out2.shape == (B2, T2)
    assert jnp.allclose(out2, ref2, atol=1e-4, rtol=1e-3), "test2 mismatch vs reference"
    assert jnp.allclose(jnp.sum(out2, axis=1), jnp.ones((B2,)), atol=1e-4)

    print("KERNEL_OK")
</pallas_src>

<mosaic_0001>
module attributes {stable_mosaic.version = 11 : i64} {
  func.func @kernel(%arg0: i32, %arg1: i32, %arg2: memref<1x1x32xf32, #tpu.memory_space<vmem>>, %arg3: memref<32x32xf32, #tpu.memory_space<vmem>>, %arg4: memref<1x32xf32, #tpu.memory_space<vmem>>, %arg5: memref<1x128x32xf32, #tpu.memory_space<vmem>>, %arg6: memref<1x1x128xf32, #tpu.memory_space<vmem>>, %arg7: memref<1x32xf32, #tpu.memory_space<vmem>>) attributes {dimension_semantics = [#tpu.dimension_semantics<parallel>, #tpu.dimension_semantics<arbitrary>], iteration_bounds = array<i64: 2, 1>, scalar_prefetch = 0 : i64, scratch_operands = 1 : i64, tpu.core_type = #tpu.core_type<tc>, window_params = [{transform_indices = @transform_0, window_bounds = array<i64: 1, 1, 32>}, {pipeline_mode = #tpu.pipeline_mode<synchronous>, transform_indices = @transform_1, window_bounds = array<i64: 32, 32>}, {pipeline_mode = #tpu.pipeline_mode<synchronous>, transform_indices = @transform_2, window_bounds = array<i64: 1, 32>}, {transform_indices = @transform_3, window_bounds = array<i64: 1, 128, 32>}, {transform_indices = @transform_4, window_bounds = array<i64: 1, 1, 128>}]} {
    %c0_i32 = arith.constant 0 : i32
    %0 = arith.cmpi eq, %arg1, %c0_i32 : i32
    %1 = arith.extui %0 : i1 to i32
    %c0_i32_0 = arith.constant 0 : i32
    %2 = arith.cmpi ne, %1, %c0_i32_0 : i32
    scf.if %2 {
      %c0_9 = arith.constant 0 : index
      %c0_10 = arith.constant 0 : index
      %c0_11 = arith.constant 0 : index
      %14 = vector.load %arg2[%c0_9, %c0_10, %c0_11] : memref<1x1x32xf32, #tpu.memory_space<vmem>>, vector<1x1x32xf32>
      %15 = vector.shape_cast %14 : vector<1x1x32xf32> to vector<1x32xf32>
      %c0_12 = arith.constant 0 : index
      %c0_13 = arith.constant 0 : index
      %16 = vector.load %arg3[%c0_12, %c0_13] : memref<32x32xf32, #tpu.memory_space<vmem>>, vector<32x32xf32>
      %cst_14 = arith.constant dense<0.000000e+00> : vector<1x32xf32>
      %17 = tpu.matmul %15, %16, %cst_14 {dimension_numbers = #tpu.dot_dimension_numbers<[1], [1], [0], [0], [0, 0, 1, 0], [], []>} : vector<1x32xf32>, vector<32x32xf32>, vector<1x32xf32> -> vector<1x32xf32>
      %c0_15 = arith.constant 0 : index
      %c0_16 = arith.constant 0 : index
      %18 = vector.load %arg4[%c0_15, %c0_16] : memref<1x32xf32, #tpu.memory_space<vmem>>, vector<1x32xf32>
      %19 = arith.addf %17, %18 : vector<1x32xf32>
      %c0_17 = arith.constant 0 : index
      %c0_18 = arith.constant 0 : index
      %20 = vector.load %arg7[%c0_17, %c0_18] : memref<1x32xf32, #tpu.memory_space<vmem>>, vector<1x32xf32>
      tpu.vector_store %arg7[%c0_17, %c0_18], %19 {strides = array<i32>} : memref<1x32xf32, #tpu.memory_space<vmem>>, vector<1x32xf32>,
    } else {
    }
    %c0 = arith.constant 0 : index
    %c0_1 = arith.constant 0 : index
    %3 = vector.load %arg7[%c0, %c0_1] : memref<1x32xf32, #tpu.memory_space<vmem>>, vector<1x32xf32>
    %c0_2 = arith.constant 0 : index
    %c0_3 = arith.constant 0 : index
    %c0_4 = arith.constant 0 : index
    %4 = vector.load %arg5[%c0_2, %c0_3, %c0_4] : memref<1x128x32xf32, #tpu.memory_space<vmem>>, vector<1x128x32xf32>
    %5 = vector.shape_cast %4 : vector<1x128x32xf32> to vector<128x32xf32>
    %cst = arith.constant dense<0.000000e+00> : vector<1x128xf32>
    %6 = tpu.matmul %3, %5, %cst {dimension_numbers = #tpu.dot_dimension_numbers<[1], [1], [0], [0], [0, 0, 1, 0], [], []>} : vector<1x32xf32>, vector<128x32xf32>, vector<1x128xf32> -> vector<1x128xf32>
    %c0_5 = arith.constant 0 : index
    %7 = arith.index_cast %arg1 : i32 to index
    %c0_6 = arith.constant 0 : index
    %8 = vector.load %arg6[%c0_5, %7, %c0_6] : memref<1x1x128xf32, #tpu.memory_space<vmem>>, vector<1x1x128xf32>
    %9 = vector.shape_cast %8 : vector<1x1x128xf32> to vector<1x128xf32>
    %10 = vector.shape_cast %6 : vector<1x128xf32> to vector<1x1x128xf32>
    tpu.vector_store %arg6[%c0_5, %7, %c0_6], %10 {strides = array<i32>} : memref<1x1x128xf32, #tpu.memory_space<vmem>>, vector<1x1x128xf32>,
    %c0_i32_7 = arith.constant 0 : i32
    %11 = arith.cmpi eq, %arg1, %c0_i32_7 : i32
    %12 = arith.extui %11 : i1 to i32
    %c0_i32_8 = arith.constant 0 : i32
    %13 = arith.cmpi ne, %12, %c0_i32_8 : i32
    scf.if %13 {
      %c0_9 = arith.constant 0 : index
      %c0_10 = arith.constant 0 : index
      %c0_11 = arith.constant 0 : index
      %14 = vector.load %arg6[%c0_9, %c0_10, %c0_11] : memref<1x1x128xf32, #tpu.memory_space<vmem>>, vector<1x1x128xf32>
      %15 = vector.shape_cast %14 : vector<1x1x128xf32> to vector<1x128xf32>
      %16 = tpu.iota {dimensions = array<i32: 0>} : vector<1x128xi32>
      %17 = tpu.iota {dimensions = array<i32: 1>} : vector<1x128xi32>
      %c128_i32 = arith.constant 128 : i32
      %18 = vector.broadcast %c128_i32 : i32 to vector<1x128xi32>
      %19 = arith.muli %16, %18 : vector<1x128xi32>
      %20 = arith.addi %19, %17 : vector<1x128xi32>
      %c8_i32 = arith.constant 8 : i32
      %21 = vector.broadcast %c8_i32 : i32 to vector<1x128xi32>
      %22 = arith.cmpi slt, %20, %21 : vector<1x128xi32>
      %cst_12 = arith.constant -1.000000e+30 : f32
      %23 = vector.broadcast %cst_12 : f32 to vector<1x128xf32>
      %24 = arith.select %22, %15, %23 : vector<1x128xi1>, vector<1x128xf32>
      %cst_13 = arith.constant dense<0xFF800000> : vector<1xf32>
      %25 = vector.multi_reduction <maximumf>, %24, %cst_13 [1] : vector<1x128xf32> to vector<1xf32>
      %26 = vector.shape_cast %25 : vector<1xf32> to vector<1x1xf32>
      %cst_14 = arith.constant dense<0xFF800000> : vector<1xf32>
      %27 = vector.multi_reduction <maximumf>, %26, %cst_14 [0] : vector<1x1xf32> to vector<1xf32>
      %28 = vector.shape_cast %27 : vector<1xf32> to vector<1x1xf32>
      %29 = vector.broadcast %28 : vector<1x1xf32> to vector<1x128xf32>
      %30 = arith.subf %24, %29 : vector<1x128xf32>
      %31 = math.exp %30 : vector<1x128xf32>
      %cst_15 = arith.constant dense<0.000000e+00> : vector<1xf32>
      %32 = vector.multi_reduction <add>, %31, %cst_15 [1] : vector<1x128xf32> to vector<1xf32>
      %33 = vector.shape_cast %32 : vector<1xf32> to vector<1x1xf32>
      %cst_16 = arith.constant dense<0.000000e+00> : vector<1xf32>
      %34 = vector.multi_reduction <add>, %33, %cst_16 [0] : vector<1x1xf32> to vector<1xf32>
      %35 = vector.shape_cast %34 : vector<1xf32> to vector<1x1xf32>
      %36 = tpu.reciprocal %35 {approx = true} : vector<1x1xf32> -> vector<1x1xf32>
      %37 = arith.mulf %35, %36 : vector<1x1xf32>
      %cst_17 = arith.constant 2.000000e+00 : f32
      %38 = vector.broadcast %cst_17 : f32 to vector<1x1xf32>
      %39 = arith.subf %38, %37 : vector<1x1xf32>
      %40 = arith.mulf %36, %39 : vector<1x1xf32>
      %41 = vector.broadcast %40 : vector<1x1xf32> to vector<1x128xf32>
      %42 = arith.mulf %31, %41 : vector<1x128xf32>
      %c0_18 = arith.constant 0 : index
      %c0_19 = arith.constant 0 : index
      %c0_20 = arith.constant 0 : index
      %43 = vector.load %arg6[%c0_18, %c0_19, %c0_20] : memref<1x1x128xf32, #tpu.memory_space<vmem>>, vector<1x1x128xf32>
      %44 = vector.shape_cast %43 : vector<1x1x128xf32> to vector<1x128xf32>
      %45 = vector.shape_cast %42 : vector<1x128xf32> to vector<1x1x128xf32>
      tpu.vector_store %arg6[%c0_18, %c0_19, %c0_20], %45 {strides = array<i32>} : memref<1x1x128xf32, #tpu.memory_space<vmem>>, vector<1x1x128xf32>,
    } else {
    }
    return
  }
  func.func @transform_0(%arg0: i32, %arg1: i32) -> (i32, i32, i32) {
    %c0_i32 = arith.constant 0 : i32
    %c0_i32_0 = arith.constant 0 : i32
    %c0_i32_1 = arith.constant 0 : i32
    return %arg0, %c0_i32, %c0_i32_0 : i32, i32, i32
  }
  func.func @transform_1(%arg0: i32, %arg1: i32) -> (i32, i32) {
    %c0_i32 = arith.constant 0 : i32
    %c0_i32_0 = arith.constant 0 : i32
    %c0_i32_1 = arith.constant 0 : i32
    return %c0_i32, %c0_i32_0 : i32, i32
  }
  func.func @transform_2(%arg0: i32, %arg1: i32) -> (i32, i32) {
    %c0_i32 = arith.constant 0 : i32
    %c0_i32_0 = arith.constant 0 : i32
    %c0_i32_1 = arith.constant 0 : i32
    return %c0_i32, %c0_i32_0 : i32, i32
  }
  func.func @transform_3(%arg0: i32, %arg1: i32) -> (i32, i32, i32) {
    %c0_i32 = arith.constant 0 : i32
    %c0_i32_0 = arith.constant 0 : i32
    return %arg0, %arg1, %c0_i32 : i32, i32, i32
  }
  func.func @transform_4(%arg0: i32, %arg1: i32) -> (i32, i32, i32) {
    %c0_i32 = arith.constant 0 : i32
    %c0_i32_0 = arith.constant 0 : i32
    %c0_i32_1 = arith.constant 0 : i32
    return %arg0, %c0_i32, %c0_i32_0 : i32, i32, i32
  }
}

</mosaic_0001>

<bundles_post_ra>
// kernel: tpu_custom_call.1
= control target key start
LH: loop header
LB: loop body
LE: loop exit
PB: predicated region body
PF: predicated region fallthrough
CT: control target
= control target key end

     0   :  { %9 = vsyncpa [#allocation4], 0  ;;  %s852_s0 = inlined_call_operand.vmem [shape: f32[2,1,32], index: 0, kind: input, shape index: {}]   ;;  %s853_s1 = inlined_call_operand.vmem [shape: f32[32,32], index: 1, kind: input, shape index: {}]   ;;  %s854_s2 = inlined_call_operand.vmem [shape: f32[1,32], index: 2, kind: input, shape index: {}]   ;;  %s855_s3 = inlined_call_operand.vmem [shape: f32[2,128,32], index: 3, kind: input, shape index: {}]   ;;  %s856_s4 = inlined_call_operand.hbm [shape: f32[2,1,128], index: 4, kind: output, shape index: {}]  }
   0x1   :  { %11 = vsyncpa [#allocation4 + $0x1], 0  ;;  %s693_s15 = smov 0   ;;  %s695_s16 = smov 0  }
   0x2   :  { %s697_s17 = smov 0   ;;  %s699_s18 = smov 0  }
   0x3   :  { %s701_s19 = smov 0   ;;  %s703_s20 = smov 0  }
   0x4 LB: > { %s497_s21 = sadd.s32 4294967295, %s666_s20   ;;  %s498_s22 = sadd.s32 4294967294, %s666_s20   ;;  %s666_s20 = sphi %s703_s20, %s17_s20   ;;  %s662_s19 = sphi %s701_s19, %s863_s19   ;;  %s658_s18 = sphi %s699_s18, %s862_s18   ;;  %s654_s17 = sphi %s697_s17, %s861_s17   ;;  %s650_s16 = sphi %s695_s16, %s860_s16   ;;  %s646_s15 = sphi %s693_s15, %s859_s15  }
   0x5   : > { %s29_s23 = sadd.s32 1, %s662_s19  ;;  %s132_s24 = sadd.s32 1, %s654_s17 }
   0x6   : > { %p31_p0 = scmp.ge.s32.totalorder %s29_s23, 2  ;;  %p142_p1 = scmp.ne.s32.totalorder %s654_s17, %s650_s16 }
   0x7   : > { %p143_p2 = scmp.eq.s32.totalorder %s497_s21, 1  ;;  %p148_p3 = scmp.ne.s32.totalorder %s650_s16, %s646_s15 }
   0x8   : > { %s865_s23 = smov (%p31_p0, %s29_s23), 0  ;;  %p149_p5 = scmp.eq.s32.totalorder %s498_s22, 1 }
   0x9   : > { %p733_p4 = por %p143_p2, %p142_p1  ;;  %s129_s26 = ssub.s32 %s662_s19, %s865_s23 }
   0xa   : > { %p501_p6 = scmp.ge.s32.totalorder %s666_s20, 1  ;;  %p130_p7 = scmp.eq.s32.totalorder %s129_s26, 0 }
   0xb   : > { %p740_p8 = por %p149_p5, %p148_p3  ;;  %p192_p9 = scmp.lt.s32.totalorder %s666_s20, 3 }
   0xc   : > { %s746_s28 = scalar_select %p130_p7, %s654_s17, %s132_s24  }
   0xd   : > { %p193_p10 = pnand %p501_p6, %p192_p9 }
   0xe   : > { %p224_p11 = scmp.lt.s32.totalorder (!%p193_p10), %s658_s18, 1  ;;  %s222_s5 = sand.u32 (!%p193_p10), 1, %s650_s16  }
   0xf   : > { %196 = sbr.rel (%p193_p10) target bundleno = 570 (0x23a), region = 36  ;;  %s223_s6 = scalar_lea.vmem (!%p193_p10), [#allocation3], %s222_s5 }
  0x10   : > { %s414_s9 = scalar_lea.hbm (!%p193_p10), %s856_s4, %s658_s18  ;;  %s416_s10 = sshll.u32 (!%p193_p10), %s223_s6, 4  ;;  %s417_s10 = int_to_ptr.vmem [resolvable:$true] %s416_s10 }
  0x11   : > { %s406_s12 = scalar_lea.sflag (!%p193_p10), [#allocation4], %s222_s5 }
  0x14   : > { %v245_v0 = vld [vmem:[%s853_s1 + $0x18] sm:$0xff]  ;;  %vm247_vm0 = vcmask 261120   ;;  %v244_v1 = vld [vmem:[%s853_s1 + $0x10] sm:$0xff]  ;;  %s225_s7 = scalar_select %p224_p11, %s658_s18, 1  ;;  %v243_v2 = vld [vmem:[%s853_s1 + $0x8] sm:$0xff]  ;;  %vm283_vm1 = vcmask 253952   ;;  %v380_v25 = vlaneseq }
  0x15   : > { %504 = vmatpush.xpose.msk.msra.mxu0 %vm247_vm0, %v245_v0  ;;  %v242_v5 = vld [vmem:[%s853_s1] sm:$0xff]  ;;  %vm388_vm3 = vcmask 1040384   ;;  %s608_s18 = scalar_lea.hbm %s856_s4, 2 }
  0x16   : > { %s528_s8 = sshll.u32 %s225_s7, 7  ;;  %s226_s26 = scalar_lea.vmem %s852_s0, %s225_s7  ;;  %v246_v21 = vld [vmem:[%s854_s2] sm:$0x1]  ;;  %v381_v26 = vshrl.u32 %v380_v25, 7  ;;  %v383_v27 = vand.u32 127, %v380_v25 }
  0x17   : > { %s761_s11 = scalar_lea.vmem %s855_s3, %s528_s8  ;;  %v241_v7 = vld [vmem:[%s226_s26] sm:$0x1] }
  0x18   : > { %v301_v3 = vld [vmem:[%s761_s11 + $0x78] sm:$0xff]  ;;  %v300_v4 = vld [vmem:[%s761_s11 + $0x70] sm:$0xff]  ;;  %v299_v6 = vld [vmem:[%s761_s11 + $0x68] sm:$0xff]  ;;  %v384_v28 = vmul.u32 128, %v381_v26 }
  0x19   : > { %505 = vmatpush.xpose.msk.msra.mxu0 %vm247_vm0, %v244_v1  ;;  %509 = vmatpush.xpose.msk.msra.mxu1 %vm247_vm0, %v301_v3  ;;  %v298_v8 = vld [vmem:[%s761_s11 + $0x60] sm:$0xff]  ;;  %v297_v9 = vld [vmem:[%s761_s11 + $0x58] sm:$0xff]  ;;  %v296_v10 = vld [vmem:[%s761_s11 + $0x50] sm:$0xff] }
  0x1a   : > { %v295_v11 = vld [vmem:[%s761_s11 + $0x48] sm:$0xff]  ;;  %v294_v12 = vld [vmem:[%s761_s11 + $0x40] sm:$0xff]  ;;  %v293_v13 = vld [vmem:[%s761_s11 + $0x38] sm:$0xff]  ;;  %v385_v30 = vadd.s32 %v384_v28, %v383_v27 }
  0x1b   : > { %v292_v14 = vld [vmem:[%s761_s11 + $0x30] sm:$0xff]  ;;  %v291_v15 = vld [vmem:[%s761_s11 + $0x28] sm:$0xff]  ;;  %v290_v16 = vld [vmem:[%s761_s11 + $0x20] sm:$0xff] }
  0x1c   : > { %v289_v17 = vld [vmem:[%s761_s11 + $0x18] sm:$0xff]  ;;  %v288_v18 = vld [vmem:[%s761_s11 + $0x10] sm:$0xff]  ;;  %v287_v19 = vld [vmem:[%s761_s11 + $0x8] sm:$0xff]  ;;  %vm386_vm2 = vcmp.lt.s32.totalorder %v385_v30, 8 }
  0x1d   : > { %506 = vmatpush.xpose.msk.msra.mxu0 %vm247_vm0, %v243_v2  ;;  %510 = vmatpush.xpose.msk.msra.mxu1 %vm247_vm0, %v300_v4  ;;  %v286_v20 = vld [vmem:[%s761_s11] sm:$0xff]  ;;  %s418_s11 = sshll.u32 %s414_s9, 4  ;;  %s419_s11 = int_to_ptr.hbm [resolvable:$true] %s418_s11 }
  0x1e   : > { %s602_s13 = sshra.s32 %s419_s11, 4  ;;  %s603_s13 = int_to_ptr.hbm [resolvable:$true] %s602_s13 }
  0x1f   : > { %s604_s14 = scalar_lea.hbm %s603_s13, 1  ;;  %p609_p1 = scmp.lt.s32.totalorder %s603_s13, %s856_s4 }
  0x20   : > { %p605_p12 = scmp.ne.s32.totalorder %s603_s13, %s604_s14  ;;  %p610_p2 = scmp.lt.s32.totalorder %s608_s18, %s604_s14 }
  0x21   : > { %507 = vmatpush.xpose.msk.msra.mxu0 %vm247_vm0, %v242_v5  ;;  %511 = vmatpush.xpose.msk.msra.mxu1 %vm247_vm0, %v299_v6 }
  0x22   : > { %p606_p13 = pnand %p605_p12, %p733_p4  ;;  %p611_p3 = por %p610_p2, %p609_p1 }
  0x24   : > { %508 = vmatmul.msk.f32.vlgmr.msra.gmra.mxu0 %vm247_vm0, %v241_v7  ;;  %p607_p0 = pneg %p606_p13 }
  0x25   : > { %512 = vmatpush.xpose.msk.msra.mxu1 %vm247_vm0, %v298_v8 }
  0x26   : > { %p612_p5 = pnand %p611_p3, %p607_p0 }
  0x29   : > { %513 = vmatpush.xpose.msk.msra.mxu1 %vm247_vm0, %v297_v9 }
  0x2d   : > { %514 = vmatpush.xpose.msk.msra.mxu1 %vm247_vm0, %v296_v10 }
  0x31   : > { %515 = vmatpush.xpose.msk.msra.mxu1 %vm247_vm0, %v295_v11 }
  0x35   : > { %516 = vmatpush.xpose.msk.msra.mxu1 %vm247_vm0, %v294_v12 }
  0x39   : > { %517 = vmatpush.xpose.msk.msra.mxu1 %vm247_vm0, %v293_v13 }
  0x3d   : > { %518 = vmatpush.xpose.msk.msra.mxu1 %vm247_vm0, %v292_v14 }
  0x41   : > { %519 = vmatpush.xpose.msk.msra.mxu1 %vm247_vm0, %v291_v15 }
  0x45   : > { %520 = vmatpush.xpose.msk.msra.mxu1 %vm247_vm0, %v290_v16 }
  0x49   : > { %521 = vmatpush.xpose.msk.msra.mxu1 %vm247_vm0, %v289_v17 }
  0x4d   : > { %522 = vmatpush.xpose.msk.msra.mxu1 %vm247_vm0, %v288_v18 }
  0x51   : > { %523 = vmatpush.xpose.msk.msra.mxu1 %vm247_vm0, %v287_v19 }
  0x55   : > { %524 = vmatpush.xpose.msk.msra.mxu1 %vm247_vm0, %v286_v20 }
  0xa1   : > { %v280_v22 = vpop.f32.mrf.mxu0 }
  0xa2   : > { %v281_v23 = vadd.f32 %v280_v22, %v246_v21 }
  0xa4   : > { %284 = vst.msk [vmem:[#allocation2] sm:$0x1] %vm283_vm1, %v281_v23 }
  0xab   : > { %v285_v24 = vld [vmem:[#allocation2] sm:$0x1] }
  0xac   : > { %525 = vmatmul.msk.f32.vlgmr.msra.gmra.mxu1 %vm247_vm0, %v285_v24 }
 0x129   : > { %v371_v29 = vpop.f32.mrf.mxu1 }
 0x12a   : > { %375 = vst [vmem:[%s223_s6] sm:$0x1] %v371_v29 }
 0x131   : > { %v379_v31 = vld [vmem:[%s223_s6] sm:$0x1] }
 0x132   : > { %v387_v32 = vsel %vm386_vm2, %v379_v31, -1e+30 }
 0x133   : > { %v389_v33 = vsel %vm388_vm3, %v387_v32, -inf }
 0x134   : > { %390 = vmax.xlane.f32.xlu0 %v389_v33 }
 0x1a7   : > { %v391_v34 = vpop.xlane.xlu0 %390 }
 0x1a8   : > { %v392_v35 = vsub.f32 %v387_v32, %v391_v34 }
 0x1aa   : > { %v393_v36 = vmul.f32 1.442695, %v392_v35 }
 0x1ac   : > { %584 = vpow2.f32 %v393_v36 }
 0x1b2   : > { %v585_v37 = vpop.eup %584 }
 0x1b3   : > { %v395_v38 = vsel %vm388_vm3, %v585_v37, 0.0 }
 0x1b4   : > { %396 = vadd.xlane.f32.xlu0 %v395_v38 }
 0x227   : > { %v397_v39 = vpop.xlane.xlu0 %396 }
 0x228   : > { %586 = vrcp.f32 %v397_v39 }
 0x22e   : > { %v587_v40 = vpop.eup %586 }
 0x22f   : > { %v400_v41 = vmul.f32 %v587_v40, %v397_v39 }
 0x231   : > { %v401_v42 = vsub.f32 2.0, %v400_v41 }
 0x233   : > { %v402_v43 = vmul.f32 %v587_v40, %v401_v42 }
 0x235   : > { %v403_v44 = vmul.f32 %v585_v37, %v402_v43 }
 0x237   : > { %404 = vst [vmem:[%s223_s6] sm:$0x1] %v403_v44 }
 0x238   : > { %615 = shalt.err (!%p612_p5)
}
 0x239   : > { %529 = dma.vmem_to_hbm [thread:$0]  (%p733_p4), %s417_s10, 16, %s419_s11, %s406_s12  }
 0x23a PF: > { %p535_p6 = scmp.ge.s32.totalorder %s666_s20, 2  ;;  %s430_s29 = sand.u32 1, %s646_s15  }
 0x23b   : > { %s431_s30 = scalar_lea.sflag [#allocation4], %s430_s29 }
 0x23c   : > { %p532_p7 = pnand %p535_p6, %p740_p8 }
 0x23e   : > { %p533_p9 = pneg %p532_p7 }
 0x240   : > { %641 = dma.done.wait (%p533_p9), %s431_s30, 16  }
 0x241   : > { %643 = vsyncadd (%p533_p9), %s431_s30, 4294967280  ;;  %s17_s20 = sadd.s32 1, %s666_s20   ;;  %s859_s15 = smov %s650_s16 }
 0x242   : > { %p14_p10 = scmp.ge.s32.totalorder %s17_s20, 4   ;;  %s860_s16 = smov %s654_s17 }
 0x243   : > { %s861_s17 = smov %s746_s28  ;;  %s862_s18 = smov %s662_s19 }
 0x244   : > { %s863_s19 = smov %s865_s23  ;;  %16 = sbr.rel (!%p14_p10) target bundleno = 4 (0x4), region = 83 }
 0x249   :  { %436 = vsyncpa [#allocation4], 1 }
 0x24a   :  { %438 = vsyncpa [#allocation4 + $0x1], 1 }

</bundles_post_ra>
